<compile_context>
chip_gen: v7x
topology: tpu7x:2x2x1
jax: 0.10.0
libtpu: 0.0.40
codegen_flags: <defaults>
</compile_context>

<pallas_src>
import jax
import jax.numpy as jnp
from jax.experimental import pallas as pl
from jax.experimental.pallas import tpu as pltpu


def _pick_tile(n, requested=None, candidates=(512, 256, 128)):
    """Largest candidate tile that evenly divides n (full extent fallback)."""
    if requested is not None and n % requested == 0:
        return requested
    for c in candidates:
        if n % c == 0:
            return c
    return n


# -----------------------------------------------------------------------------
# Kernel 1: fused QKV projection.  x tile is (C, THW); the three 1x1 convs
# become a single (Cqkv, C) @ (C, THW) matmul; q / k / v are sliced afterwards.
# -----------------------------------------------------------------------------
def qkv_proj_kernel(x_ref, w_ref, b_ref, q_ref, k_ref, v_ref):
    c8 = q_ref.shape[1]
    x = x_ref[0]                                              # (C, THW)
    # One lane-dense MXU pass; contraction over C (lhs last dim / rhs first).
    qkv = jax.lax.dot_general(
        w_ref[...], x, (((1,), (0,)), ((), ())),
        preferred_element_type=jnp.float32)                    # (Cqkv, THW) f32
    qkv = qkv + b_ref[...]                                     # bias (Cqkv, 1) f32
    q_ref[0] = qkv[:c8].astype(q_ref.dtype)
    k_ref[0] = qkv[c8:2 * c8].astype(k_ref.dtype)
    v_ref[0] = qkv[2 * c8:].astype(v_ref.dtype)


# -----------------------------------------------------------------------------
# Kernel 2: flash-style attention + residual, grid = (B, q_tiles, kv_tiles).
# Channel-major layout: q (C8, TQ), k (C8, TKV), v (C, TKV), out (C, TQ).
# The energy tile is (TKV, TQ), softmax stats are (1, TQ) (no transposes),
# and the PV product is a natural (C, TKV) @ (TKV, TQ) matmul.
# -----------------------------------------------------------------------------
def flash_attn_kernel(q_ref, k_ref, v_ref, x_ref, gamma_ref, o_ref,
                      m_scr, l_scr, acc_scr):
    ki = pl.program_id(2)

    @pl.when(ki == 0)
    def _():
        m_scr[...] = jnp.full_like(m_scr, -jnp.inf)
        l_scr[...] = jnp.zeros_like(l_scr)
        acc_scr[...] = jnp.zeros_like(acc_scr)

    q = q_ref[0]                                               # (C8, TQ)
    k = k_ref[0]                                               # (C8, TKV)
    v = v_ref[0]                                               # (C,  TKV)

    # s[j, i] = sum_c k[c, j] * q[c, i]  -> (TKV, TQ); f32 accumulation.
    s = jax.lax.dot_general(k, q, (((0,), (0,)), ((), ())),
                            preferred_element_type=jnp.float32)

    m_prev = m_scr[...]                                        # (1, TQ)
    m_new = jnp.maximum(m_prev, jnp.max(s, axis=0, keepdims=True))
    alpha = jnp.exp(m_prev - m_new)                            # (1, TQ)
    p = jnp.exp(s - m_new)                                     # (TKV, TQ) f32
    l_scr[...] = alpha * l_scr[...] + jnp.sum(p, axis=0, keepdims=True)
    # acc[c, i] += sum_j v[c, j] * p[j, i]
    pv = jax.lax.dot_general(v, p.astype(v.dtype), (((1,), (0,)), ((), ())),
                             preferred_element_type=jnp.float32)
    acc_scr[...] = alpha * acc_scr[...] + pv
    m_scr[...] = m_new

    @pl.when(ki == pl.num_programs(2) - 1)
    def _():
        gamma = gamma_ref[0]                                   # scalar from SMEM
        inv_l = pl.reciprocal(l_scr[...], approx=True)         # EUP slot
        out = gamma * (acc_scr[...] * inv_l) + x_ref[0].astype(jnp.float32)
        o_ref[0] = out.astype(o_ref.dtype)


# -----------------------------------------------------------------------------
# Wrapper
# -----------------------------------------------------------------------------
def attention_block(x_nchw, wq, bq, wk, bk, wv, bv, gamma, *,
                    compute_dtype=jnp.bfloat16,
                    tile_q=None, tile_kv=None, tile_proj=None):
    """SAGAN attention on x (B, C, H, W).  wq/wk: (C, C//8), wv: (C, C)."""
    B, C, H, W = x_nchw.shape
    HW = H * W
    C8 = wq.shape[1]
    Cqkv = 2 * C8 + C

    # Flattened NCHW layout (B, C, HW): reshape only touches trailing dims and
    # HW sits on the lane axis of every kernel input/output.
    x_f32 = x_nchw.reshape(B, C, HW).astype(jnp.float32)
    x_cd = x_f32.astype(compute_dtype)

    # Fused projection weight/bias: rows [q; k; v], applied as w @ x.
    w_qkv = jnp.concatenate([wq.T, wk.T, wv.T], axis=0).astype(compute_dtype)
    b_qkv = jnp.concatenate([bq, bk, bv], axis=0).reshape(Cqkv, 1).astype(jnp.float32)

    thw = _pick_tile(HW, tile_proj)
    q, k, v = pl.pallas_call(
        qkv_proj_kernel,
        out_shape=(
            jax.ShapeDtypeStruct((B, C8, HW), compute_dtype),
            jax.ShapeDtypeStruct((B, C8, HW), compute_dtype),
            jax.ShapeDtypeStruct((B, C, HW), compute_dtype),
        ),
        grid_spec=pltpu.PrefetchScalarGridSpec(
            num_scalar_prefetch=0,
            grid=(B, HW // thw),
            in_specs=[
                pl.BlockSpec((1, C, thw), lambda b, t: (b, 0, t)),
                pl.BlockSpec((Cqkv, C), lambda b, t: (0, 0)),
                pl.BlockSpec((Cqkv, 1), lambda b, t: (0, 0)),
            ],
            out_specs=[
                pl.BlockSpec((1, C8, thw), lambda b, t: (b, 0, t)),
                pl.BlockSpec((1, C8, thw), lambda b, t: (b, 0, t)),
                pl.BlockSpec((1, C, thw), lambda b, t: (b, 0, t)),
            ],
        ),
        compiler_params=pltpu.CompilerParams(
            dimension_semantics=("parallel", "parallel")),
    )(x_cd, w_qkv, b_qkv)

    tq = _pick_tile(HW, tile_q)
    tkv = _pick_tile(HW, tile_kv)
    gamma_arr = jnp.asarray(gamma, jnp.float32).reshape(1)

    out = pl.pallas_call(
        flash_attn_kernel,
        out_shape=jax.ShapeDtypeStruct((B, C, HW), jnp.float32),
        grid_spec=pltpu.PrefetchScalarGridSpec(
            num_scalar_prefetch=0,
            grid=(B, HW // tq, HW // tkv),
            in_specs=[
                pl.BlockSpec((1, C8, tq), lambda b, qi, ki: (b, 0, qi)),   # q
                pl.BlockSpec((1, C8, tkv), lambda b, qi, ki: (b, 0, ki)),  # k
                pl.BlockSpec((1, C, tkv), lambda b, qi, ki: (b, 0, ki)),   # v
                pl.BlockSpec((1, C, tq), lambda b, qi, ki: (b, 0, qi)),    # x (residual)
                pl.BlockSpec(memory_space=pltpu.MemorySpace.SMEM),         # gamma
            ],
            out_specs=pl.BlockSpec((1, C, tq), lambda b, qi, ki: (b, 0, qi)),
            scratch_shapes=[
                pltpu.VMEM((1, tq), jnp.float32),   # running max m
                pltpu.VMEM((1, tq), jnp.float32),   # running denom l
                pltpu.VMEM((C, tq), jnp.float32),   # output accumulator
            ],
        ),
        compiler_params=pltpu.CompilerParams(
            # batch & q-tile axes shard across TensorCores (v7x megacore);
            # kv axis is the sequential online-softmax reduction.
            dimension_semantics=("parallel", "parallel", "arbitrary"),
            # tiles keep per-step VMEM in the few-MiB range; 48 MiB scoped
            # limit leaves headroom even on v7x (64 MiB physical VMEM).
            vmem_limit_bytes=48 * 1024 * 1024),
    )(q, k, v, x_f32, gamma_arr)

    return out.reshape(B, C, H, W)


def attention_block_ref(x_nchw, wq, bq, wk, bk, wv, bv, gamma):
    """Pure-JAX reference mirroring the PyTorch forward (for validation)."""
    B, C, H, W = x_nchw.shape
    HW = H * W
    xf = x_nchw.reshape(B, C, HW)
    q = jnp.einsum('bchw,ck->bkhw', x_nchw, wq) + bq[None, :, None, None]
    k = jnp.einsum('bchw,ck->bkhw', x_nchw, wk) + bk[None, :, None, None]
    v = jnp.einsum('bchw,ck->bkhw', x_nchw, wv) + bv[None, :, None, None]
    q = q.reshape(B, -1, HW)
    k = k.reshape(B, -1, HW)
    v = v.reshape(B, C, HW)
    energy = jnp.einsum('bci,bcj->bij', q, k)
    attn = jax.nn.softmax(energy, axis=-1)
    out = jnp.einsum('bcj,bij->bci', v, attn)
    out = gamma * out + xf
    return out.reshape(B, C, H, W)


if __name__ == "__main__":
    # Small shapes consistent with the module: C divisible by 8, HW = 256.
    B, C, H, W = 2, 32, 16, 16
    C8 = C // 8

    key = jax.random.PRNGKey(0)
    kx, kq, kk, kv, kbq, kbk, kbv = jax.random.split(key, 7)

    x = jax.random.normal(kx, (B, C, H, W), dtype=jnp.float32)
    # 1x1 conv weight (Cout, Cin, 1, 1) stored here as (Cin, Cout).
    wq = 0.1 * jax.random.normal(kq, (C, C8), dtype=jnp.float32)
    wk = 0.1 * jax.random.normal(kk, (C, C8), dtype=jnp.float32)
    wv = 0.1 * jax.random.normal(kv, (C, C), dtype=jnp.float32)
    bq = 0.1 * jax.random.normal(kbq, (C8,), dtype=jnp.float32)
    bk = 0.1 * jax.random.normal(kbk, (C8,), dtype=jnp.float32)
    bv = 0.1 * jax.random.normal(kbv, (C,), dtype=jnp.float32)
    gamma = jnp.asarray(0.5, dtype=jnp.float32)   # nonzero: attention path matters

    ref = attention_block_ref(x, wq, bq, wk, bk, wv, bv, gamma)

    # 1) f32 path, small tiles -> (2 q-tiles x 2 kv-tiles): exercises the
    #    online-softmax accumulation across kv steps.
    out_f32 = jax.block_until_ready(attention_block(
        x, wq, bq, wk, bk, wv, bv, gamma,
        compute_dtype=jnp.float32, tile_q=128, tile_kv=128))
    assert out_f32.shape == (B, C, H, W)
    assert jnp.allclose(out_f32, ref, atol=2e-3, rtol=2e-3), "f32 mismatch vs reference"

    # 2) bf16 MXU path with default (single-tile) tiling.
    out_bf16 = jax.block_until_ready(attention_block(
        x, wq, bq, wk, bk, wv, bv, gamma))
    assert jnp.allclose(out_bf16, ref, atol=5e-2, rtol=5e-2), "bf16 mismatch vs reference"

    # 3) gamma = 0 (module's init value): exact residual passthrough.
    out_g0 = jax.block_until_ready(attention_block(
        x, wq, bq, wk, bk, wv, bv, jnp.zeros((), jnp.float32)))
    assert jnp.allclose(out_g0, x, atol=1e-5, rtol=1e-5), "gamma=0 mismatch"

    print("KERNEL_OK")
</pallas_src>

<mosaic_0001>
module attributes {stable_mosaic.version = 11 : i64} {
  func.func @qkv_proj_kernel(%arg0: i32, %arg1: i32, %arg2: memref<1x32x256xf32, #tpu.memory_space<vmem>>, %arg3: memref<40x32xf32, #tpu.memory_space<vmem>>, %arg4: memref<40x1xf32, #tpu.memory_space<vmem>>, %arg5: memref<1x4x256xf32, #tpu.memory_space<vmem>>, %arg6: memref<1x4x256xf32, #tpu.memory_space<vmem>>, %arg7: memref<1x32x256xf32, #tpu.memory_space<vmem>>) attributes {dimension_semantics = [#tpu.dimension_semantics<parallel>, #tpu.dimension_semantics<parallel>], iteration_bounds = array<i64: 2, 1>, scalar_prefetch = 0 : i64, scratch_operands = 0 : i64, tpu.core_type = #tpu.core_type<tc>, window_params = [{transform_indices = @transform_0, window_bounds = array<i64: 1, 32, 256>}, {pipeline_mode = #tpu.pipeline_mode<synchronous>, transform_indices = @transform_1, window_bounds = array<i64: 40, 32>}, {pipeline_mode = #tpu.pipeline_mode<synchronous>, transform_indices = @transform_2, window_bounds = array<i64: 40, 1>}, {transform_indices = @transform_3, window_bounds = array<i64: 1, 4, 256>}, {transform_indices = @transform_4, window_bounds = array<i64: 1, 4, 256>}, {transform_indices = @transform_5, window_bounds = array<i64: 1, 32, 256>}]} {
    %c0 = arith.constant 0 : index
    %c0_0 = arith.constant 0 : index
    %c0_1 = arith.constant 0 : index
    %0 = vector.load %arg2[%c0, %c0_0, %c0_1] : memref<1x32x256xf32, #tpu.memory_space<vmem>>, vector<1x32x256xf32>
    %1 = vector.shape_cast %0 : vector<1x32x256xf32> to vector<32x256xf32>
    %c0_2 = arith.constant 0 : index
    %c0_3 = arith.constant 0 : index
    %2 = vector.load %arg3[%c0_2, %c0_3] : memref<40x32xf32, #tpu.memory_space<vmem>>, vector<40x32xf32>
    %cst = arith.constant dense<0.000000e+00> : vector<40x256xf32>
    %3 = tpu.matmul %2, %1, %cst {dimension_numbers = #tpu.dot_dimension_numbers<[1], [0], [0], [1], [0, 0, 1, 1], [], []>} : vector<40x32xf32>, vector<32x256xf32>, vector<40x256xf32> -> vector<40x256xf32>
    %c0_4 = arith.constant 0 : index
    %c0_5 = arith.constant 0 : index
    %4 = vector.load %arg4[%c0_4, %c0_5] : memref<40x1xf32, #tpu.memory_space<vmem>>, vector<40x1xf32>
    %5 = vector.broadcast %4 : vector<40x1xf32> to vector<40x256xf32>
    %6 = arith.addf %3, %5 : vector<40x256xf32>
    %7 = vector.extract_strided_slice %6 {offsets = [0, 0], sizes = [4, 256], strides = [1, 1]} : vector<40x256xf32> to vector<4x256xf32>
    %c0_6 = arith.constant 0 : index
    %c0_7 = arith.constant 0 : index
    %c0_8 = arith.constant 0 : index
    %8 = vector.load %arg5[%c0_6, %c0_7, %c0_8] : memref<1x4x256xf32, #tpu.memory_space<vmem>>, vector<1x4x256xf32>
    %9 = vector.shape_cast %8 : vector<1x4x256xf32> to vector<4x256xf32>
    %10 = vector.shape_cast %7 : vector<4x256xf32> to vector<1x4x256xf32>
    tpu.vector_store %arg5[%c0_6, %c0_7, %c0_8], %10 {strides = array<i32>} : memref<1x4x256xf32, #tpu.memory_space<vmem>>, vector<1x4x256xf32>,
    %11 = vector.extract_strided_slice %6 {offsets = [4, 0], sizes = [4, 256], strides = [1, 1]} : vector<40x256xf32> to vector<4x256xf32>
    %c0_9 = arith.constant 0 : index
    %c0_10 = arith.constant 0 : index
    %c0_11 = arith.constant 0 : index
    %12 = vector.load %arg6[%c0_9, %c0_10, %c0_11] : memref<1x4x256xf32, #tpu.memory_space<vmem>>, vector<1x4x256xf32>
    %13 = vector.shape_cast %12 : vector<1x4x256xf32> to vector<4x256xf32>
    %14 = vector.shape_cast %11 : vector<4x256xf32> to vector<1x4x256xf32>
    tpu.vector_store %arg6[%c0_9, %c0_10, %c0_11], %14 {strides = array<i32>} : memref<1x4x256xf32, #tpu.memory_space<vmem>>, vector<1x4x256xf32>,
    %15 = vector.extract_strided_slice %6 {offsets = [8, 0], sizes = [32, 256], strides = [1, 1]} : vector<40x256xf32> to vector<32x256xf32>
    %c0_12 = arith.constant 0 : index
    %c0_13 = arith.constant 0 : index
    %c0_14 = arith.constant 0 : index
    %16 = vector.load %arg7[%c0_12, %c0_13, %c0_14] : memref<1x32x256xf32, #tpu.memory_space<vmem>>, vector<1x32x256xf32>
    %17 = vector.shape_cast %16 : vector<1x32x256xf32> to vector<32x256xf32>
    %18 = vector.shape_cast %15 : vector<32x256xf32> to vector<1x32x256xf32>
    tpu.vector_store %arg7[%c0_12, %c0_13, %c0_14], %18 {strides = array<i32>} : memref<1x32x256xf32, #tpu.memory_space<vmem>>, vector<1x32x256xf32>,
    return
  }
  func.func @transform_0(%arg0: i32, %arg1: i32) -> (i32, i32, i32) {
    %c0_i32 = arith.constant 0 : i32
    %c0_i32_0 = arith.constant 0 : i32
    return %arg0, %c0_i32, %arg1 : i32, i32, i32
  }
  func.func @transform_1(%arg0: i32, %arg1: i32) -> (i32, i32) {
    %c0_i32 = arith.constant 0 : i32
    %c0_i32_0 = arith.constant 0 : i32
    %c0_i32_1 = arith.constant 0 : i32
    return %c0_i32, %c0_i32_0 : i32, i32
  }
  func.func @transform_2(%arg0: i32, %arg1: i32) -> (i32, i32) {
    %c0_i32 = arith.constant 0 : i32
    %c0_i32_0 = arith.constant 0 : i32
    %c0_i32_1 = arith.constant 0 : i32
    return %c0_i32, %c0_i32_0 : i32, i32
  }
  func.func @transform_3(%arg0: i32, %arg1: i32) -> (i32, i32, i32) {
    %c0_i32 = arith.constant 0 : i32
    %c0_i32_0 = arith.constant 0 : i32
    return %arg0, %c0_i32, %arg1 : i32, i32, i32
  }
  func.func @transform_4(%arg0: i32, %arg1: i32) -> (i32, i32, i32) {
    %c0_i32 = arith.constant 0 : i32
    %c0_i32_0 = arith.constant 0 : i32
    return %arg0, %c0_i32, %arg1 : i32, i32, i32
  }
  func.func @transform_5(%arg0: i32, %arg1: i32) -> (i32, i32, i32) {
    %c0_i32 = arith.constant 0 : i32
    %c0_i32_0 = arith.constant 0 : i32
    return %arg0, %c0_i32, %arg1 : i32, i32, i32
  }
}

</mosaic_0001>

<bundles_post_ra>
// kernel: tpu_custom_call.1
= control target key start
LH: loop header
LB: loop body
LE: loop exit
PB: predicated region body
PF: predicated region fallthrough
CT: control target
= control target key end

     0   :  { %s1311_s0 = inlined_call_operand.hbm [shape: f32[2,32,256], index: 0, kind: input, shape index: {}]   ;;  %s1312_s1 = inlined_call_operand.vmem [shape: f32[40,32], index: 1, kind: input, shape index: {}]   ;;  %s1313_s2 = inlined_call_operand.vmem [shape: f32[40,1], index: 2, kind: input, shape index: {}]   ;;  %s1314_s3 = inlined_call_operand.hbm [shape: f32[2,4,256], index: 3, kind: output, shape index: {0}]   ;;  %s1315_s4 = inlined_call_operand.hbm [shape: f32[2,4,256], index: 4, kind: output, shape index: {1}]   ;;  %s1316_s5 = inlined_call_operand.hbm [shape: f32[2,32,256], index: 5, kind: output, shape index: {2}]  }
   0x1   :  { %1319 = sst [smem:[#allocation12_spill]] %s1311_s0 }
   0x2   :  { %1320 = sst [smem:[#allocation13_spill]] %s1312_s1 }
   0x3   :  { %11 = vsyncpa [#allocation3], 0 }
   0x4   :  { %13 = vsyncpa [#allocation3 + $0x1], 0 }
   0x5   :  { %14 = vsyncpa [#allocation4], 0 }
   0x6   :  { %16 = vsyncpa [#allocation4 + $0x1], 0 }
   0x7   :  { %17 = vsyncpa [#allocation7], 0 }
   0x8   :  { %19 = vsyncpa [#allocation7 + $0x1], 0  ;;  %s1007_s18 = smov 0   ;;  %s1009_s19 = smov 0  }
   0x9   :  { %s1011_s20 = smov 0   ;;  %s1013_s21 = smov 0  }
   0xa   :  { %s1015_s22 = smov 0   ;;  %s1017_s23 = smov 0  }
   0xb LB: > { %s1038_s24 = sadd.s32 4294967295, %s965_s23   ;;  %s1318_s25 = sadd.s32 4294967294, %s965_s23   ;;  %s965_s23 = sphi %s1017_s23, %s25_s23   ;;  %s961_s22 = sphi %s1015_s22, %s1337_s22   ;;  %s957_s21 = sphi %s1013_s21, %s1336_s21   ;;  %s953_s20 = sphi %s1011_s20, %s1335_s20   ;;  %s949_s19 = sphi %s1009_s19, %s1334_s19   ;;  %s945_s18 = sphi %s1007_s18, %s1333_s18  }
   0xc   : > { %s37_s26 = sadd.s32 1, %s961_s22  ;;  %s46_s27 = sadd.s32 1, %s953_s20 }
   0xd   : > { %p39_p0 = scmp.ge.s32.totalorder %s37_s26, 2  ;;  %p53_p1 = scmp.ne.s32.totalorder %s953_s20, %s949_s19 }
   0xe   : > { %p54_p2 = scmp.eq.s32.totalorder %s965_s23, 0  ;;  %p59_p3 = scmp.ne.s32.totalorder %s949_s19, %s945_s18 }
   0xf   : > { %s1339_s26 = smov (%p39_p0, %s37_s26), 0  ;;  %p60_p5 = scmp.eq.s32.totalorder %s1038_s24, 0 }
  0x10   : > { %p1050_p4 = por %p54_p2, %p53_p1  ;;  %s41_s29 = ssub.s32 %s961_s22, %s1339_s26 }
  0x11   : > { %p127_p6 = scmp.eq.s32.totalorder %s1038_s24, 1  ;;  %p44_p7 = scmp.eq.s32.totalorder %s41_s29, 0 }
  0x12   : > { %p1058_p8 = por %p60_p5, %p59_p3  ;;  %p133_p10 = scmp.eq.s32.totalorder %s1318_s25, 1 }
  0x13   : > { %p1062_p9 = por %p127_p6, %p53_p1  ;;  %p735_p13 = scmp.lt.s32.totalorder %s965_s23, 2 }
  0x14   : > { %s1069_s7 = scalar_select %p44_p7, %s953_s20, %s46_s27  }
  0x15   : > { %s1323_s6 = scalar_select %p1062_p9, 1, 0 }
  0x16   : > { %p1071_p11 = por %p133_p10, %p59_p3  ;;  %s215_s9 = sand.u32 1, %s953_s20  }
  0x17   : > { %s673_s10 = sshll.u32 %s215_s9, 6  ;;  %s697_s11 = sshll.u32 %s961_s22, 10 }
  0x18   : > { %s1324_s8 = scalar_select %p1071_p11, 1, 0 }
  0x19   : > { %s1325_s0 = sld [smem:[#allocation12_spill]]  ;;  %s219_s15 = scalar_lea.vmem [#allocation2], %s673_s10 }
  0x1a   : > { %s228_s16 = sshll.u32 %s219_s15, 4  ;;  %p1088_p0 = pnand %p735_p13, %p1050_p4  ;;  %s1084_s16 = int_to_ptr.vmem [resolvable:$true] %s228_s16 }
  0x1b   : > { %s1093_s27 = scalar_lea.sflag [#allocation3], %s215_s9 }
  0x1c   : > { %p795_p3 = pneg %p1088_p0 }
  0x1f   : > { %s1082_s14 = scalar_lea.hbm %s1325_s0, %s697_s11  ;;  %s798_s28 = scalar_lea.hbm %s1325_s0, 2048 }
  0x20   : > { %s793_s29 = scalar_lea.hbm %s1082_s14, 1024  ;;  %p799_p4 = scmp.lt.u32.totalorder %s1082_s14, %s1325_s0 }
  0x21   : > { %p794_p2 = scmp.ne.s32.totalorder %s1082_s14, %s793_s29  ;;  %p800_p7 = scmp.lt.u32.totalorder %s798_s28, %s793_s29 }
  0x22   : > { %p802_p13 = scmp.lt.u32.totalorder %s793_s29, %s1082_s14 }
  0x23   : > { %p796_p5 = pnand %p795_p3, %p794_p2  ;;  %p801_p10 = por %p800_p7, %p799_p4 }
  0x25   : > { %p797_p6 = pneg %p796_p5  ;;  %p803_p12 = por %p802_p13, %p801_p10 }
  0x27   : > { %p804_p1 = pnand %p803_p12, %p797_p6 }
  0x29   : > { %807 = shalt.err (!%p804_p1)
}
  0x2a   : > { %s808_s9 = scalar_lea.vmem %s1084_s16, 1024  ;;  %s967_s15 = smov [#allocation2]  }
  0x2b   : > { %p809_p2 = scmp.ne.s32.totalorder %s1084_s16, %s808_s9  ;;  %s813_s10 = sshll.u32 %s967_s15, 4  ;;  %s814_s10 = int_to_ptr.vmem [resolvable:$false] %s813_s10 }
  0x2c   : > { %s815_s11 = scalar_lea.vmem %s814_s10, 2048  ;;  %p816_p9 = scmp.lt.s32.totalorder %s1084_s16, %s814_s10 }
  0x2d   : > { %p811_p5 = pnand %p809_p2, %p795_p3  ;;  %p817_p4 = scmp.lt.s32.totalorder %s815_s11, %s808_s9 }
  0x2f   : > { %p812_p11 = pneg %p811_p5  ;;  %p818_p7 = por %p817_p4, %p816_p9 }
  0x31   : > { %p819_p10 = pnand %p818_p7, %p812_p11 }
  0x33   : > { %822 = shalt.err (!%p819_p10)
}
  0x34   : > { %s968_s29 = smov 256   ;;  %s969_s28 = smov 16  }
  0x35   : > { %724 = dma.hbm_to_vmem [thread:$0]  (!%p1088_p0), %s1082_s14, 1024, %s1084_s16, %s1093_s27, %s968_s29, %s968_s29, %s969_s28  }
  0x36   : > { %p236_p12 = scmp.lt.s32.totalorder %s965_s23, 3  ;;  %p1327_p1 = scmp.ge.s32.totalorder %s965_s23, 1 }
  0x38   : > { %p237_p3 = pnand %p1327_p1, %p236_p12 }
  0x39   : > { %s1125_s12 = sand.u32 (!%p237_p3), 1, %s949_s19  }
  0x3a   : > { %240 = sbr.rel (%p237_p3) target bundleno = 356 (0x164), region = 32  ;;  %s677_s13 = sshll.u32 (!%p237_p3), %s1125_s12, 6 }
  0x3b   : > { %s243_s9 = scalar_lea.sflag (!%p237_p3), [#allocation3], %s1125_s12  ;;  %s246_s15 = scalar_lea.vmem (!%p237_p3), [#allocation2], %s677_s13 }
  0x41   : > { %932 = dma.done.wait (%p1058_p8), %s243_s9, 1024  }
  0x42   : > { %934 = vsyncadd (%p1058_p8), %s243_s9, 4294966272  ;;  %v970_v0 = vmov 0.0   ;;  %v971_v1 = vmov 0   ;;  %v288_v2 = vld [vmem:[%s246_s15 + $0x8] sm:$0xff]  ;;  %v290_v3 = vld [vmem:[%s246_s15 + $0x18] sm:$0xff]  ;;  %s1328_s1 = sld [smem:[#allocation13_spill]] }
  0x43   : > { %410 = vmatprep.mubr.f32.mxu0 %v970_v0  ;;  %428 = vmatprep.mubr.f32.mxu1 %v970_v0  ;;  %v287_v4 = vld [vmem:[%s246_s15] sm:$0xff]  ;;  %v701_v5 = vpack.c.bf16 %v290_v3, %v288_v2  ;;  %v289_v6 = vld [vmem:[%s246_s15 + $0x10] sm:$0xff]  ;;  %v292_v7 = vld [vmem:[%s246_s15 + $0x28] sm:$0xff]  ;;  %vm330_vm0 = vcmask 261120   ;;  %s678_s9 = sshll.u32 %s1125_s12, 3  ;;  %s698_s30 = sshll.u32 %s957_s21, 7 }
  0x44   : > { %791 = vset.pattern.permute.xlu0 %v971_v1  ;;  %792 = vset.pattern.permute.xlu1 %v971_v1  ;;  %v294_v8 = vld [vmem:[%s246_s15 + $0x38] sm:$0xff]  ;;  %v703_v9 = vpack.c.bf16 %v289_v6, %v287_v4  ;;  %v291_v11 = vld [vmem:[%s246_s15 + $0x20] sm:$0xff]  ;;  %v293_v12 = vld [vmem:[%s246_s15 + $0x30] sm:$0xff]  ;;  %s462_s15 = sand.u32 1, %s1038_s24   ;;  %s275_s14 = scalar_lea.vmem [#allocation6], %s678_s9 }
  0x45   : > { %v705_v10 = vpack.c.bf16 %v294_v8, %v292_v7  ;;  %702 = vmatprep.subr.bf16.mxu0 %v701_v5  ;;  %709 = vmatprep.subr.bf16.mxu1 %v701_v5  ;;  %v707_v13 = vpack.c.bf16 %v293_v12, %v291_v11  ;;  %v300_v14 = vld [vmem:[%s1313_s2] sm:$0xff]  ;;  %v302_v15 = vld [vmem:[%s1313_s2 + $0x10] sm:$0xff]  ;;  %v301_v16 = vld [vmem:[%s1313_s2 + $0x8] sm:$0xff]  ;;  %s500_s16 = sshll.u32 %s275_s14, 4  ;;  %s268_s17 = scalar_lea.vmem [#allocation5], %s678_s9  ;;  %s1186_s16 = int_to_ptr.vmem [resolvable:$true] %s500_s16 }
  0x46   : > { %704 = vmatpush1.bf16.msra.mxu0 %v703_v9  ;;  %711 = vmatpush1.bf16.msra.mxu1 %v703_v9  ;;  %v303_v17 = vld [vmem:[%s1313_s2 + $0x18] sm:$0xff]  ;;  %v304_v20 = vld [vmem:[%s1313_s2 + $0x20] sm:$0xff]  ;;  %s484_s27 = sshll.u32 %s268_s17, 4  ;;  %s1177_s10 = scalar_lea.vmem [#allocation8], %s677_s13  ;;  %s1193_s27 = int_to_ptr.vmem [resolvable:$true] %s484_s27 }
  0x47   : > { %706 = vmatprep.subr.bf16.mxu0 %v705_v10  ;;  %710 = vmatprep.subr.bf16.mxu1 %v705_v10  ;;  %s1183_s28 = scalar_lea.hbm %s1315_s4, %s698_s30  ;;  %s1191_s11 = scalar_lea.hbm %s1314_s3, %s698_s30 }
  0x48   : > { %307 = vperm.xlu0 %791, %v300_v14   ;;  %317 = vperm.xlu1 %792, %v302_v15   ;;  %v295_v18 = vld [vmem:[%s1328_s1] sm:$0xff]  ;;  %v298_v19 = vld [vmem:[%s1328_s1 + $0x18] sm:$0xff]  ;;  %v296_v21 = vld [vmem:[%s1328_s1 + $0x8] sm:$0xff]  ;;  %s515_s29 = sshll.u32 %s1177_s10, 4  ;;  %s700_s25 = sshll.u32 %s957_s21, 10  ;;  %s1251_s29 = int_to_ptr.vmem [resolvable:$true] %s515_s29 }
  0x49   : > { %v299_v22 = vld [vmem:[%s1328_s1 + $0x20] sm:$0xff]  ;;  %v297_v23 = vld [vmem:[%s1328_s1 + $0x10] sm:$0xff]  ;;  %s1201_s0 = scalar_lea.sflag [#allocation7], %s462_s15  ;;  %s823_s1 = scalar_lea.vmem %s1186_s16, 128 }
  0x4a   : > { %708 = vmatpush1.bf16.msra.mxu0 %v707_v13  ;;  %712 = vmatpush1.bf16.msra.mxu1 %v707_v13  ;;  %p824_p8 = scmp.ne.s32.totalorder %s1186_s16, %s823_s1  ;;  %p1329_p9 = scmp.ne.s32.totalorder %s1323_s6, 0 }
  0x4b   : > { %s972_s30 = smov [#allocation6]  }
  0x4c   : > { %312 = vperm.xlu0 %791, %v301_v16   ;;  %322 = vperm.xlu1 %792, %v303_v17   ;;  %p825_p11 = pnand %p824_p8, %p1329_p9  ;;  %s827_s13 = sshll.u32 %s972_s30, 4  ;;  %s828_s13 = int_to_ptr.vmem [resolvable:$false] %s827_s13 }
  0x4d   : > { %681 = vmatmul.mubr.msk.f32.vlgmr.msra.gmra.mrb[0].mxu0 %vm330_vm0, %v295_v18  ;;  %684 = vmatmul.mubr.msk.f32.vlgmr.msra.gmra.mrb[0].mxu1 %vm330_vm0, %v298_v19  ;;  %s829_s9 = scalar_lea.vmem %s828_s13, 256  ;;  %p830_p6 = scmp.lt.s32.totalorder %s1186_s16, %s828_s13 }
  0x4e   : > { %416 = vmatprep.mubr.f32.mxu0 %v970_v0  ;;  %434 = vmatprep.mubr.f32.mxu1 %v970_v0  ;;  %p826_p0 = pneg %p825_p11  ;;  %p831_p13 = scmp.lt.s32.totalorder %s829_s9, %s823_s1 }
  0x50   : > { %327 = vperm.xlu0 %791, %v304_v20   ;;  %p832_p2 = por %p831_p13, %p830_p6 }
  0x51   : > { %682 = vmatmul.mubr.msk.f32.gmra.mrb[2].mxu0 %vm330_vm0, %v296_v21  ;;  %685 = vmatmul.mubr.msk.f32.gmra.mrb[2].mxu1 %vm330_vm0, %v299_v22 }
  0x52   : > { %422 = vmatprep.mubr.f32.mxu0 %v970_v0  ;;  %p833_p5 = pnand %p832_p2, %p826_p0 }
  0x55   : > { %683 = vmatmul.mubr.msk.f32.gmra.mrb[4].mxu0 %vm330_vm0, %v297_v23 }
  0xc7   : > { %v308_v24 = vpop.permute.xlu0 %307  ;;  %v1170_v25 = vpop.permute.xlu1 %317 }
  0xcb   : > { %v313_v26 = vpop.permute.xlu0 %312  ;;  %v323_v27 = vpop.permute.xlu1 %322 }
  0xcf   : > { %v328_v36 = vpop.permute.xlu0 %327 }
 0x120   : > { %v412_v28 = vpop.f32.mrb[0].mxu0  ;;  %v430_v29 = vpop.f32.mrb[0].mxu1 }
 0x121   : > { %v413_v30 = vadd.f32 %v412_v28, %v308_v24  ;;  %v414_v31 = vpop.f32.mrb[1].mxu0  ;;  %v432_v32 = vpop.f32.mrb[1].mxu1  ;;  %v431_v33 = vadd.f32 %v430_v29, %v323_v27 }
 0x122   : > { %v415_v34 = vadd.f32 %v414_v31, %v308_v24  ;;  %v433_v35 = vadd.f32 %v432_v32, %v323_v27 }
 0x123   : > { %453 = vst [vmem:[%s1177_s10 + $0x20] sm:$0xff] %v431_v33 }
 0x124   : > { %v443_v37 = vcombine.low %v413_v30, %v415_v34  ;;  %v446_v38 = vcombine.high %v413_v30, %v415_v34  ;;  %454 = vst [vmem:[%s1177_s10 + $0x28] sm:$0xff] %v433_v35  ;;  %v418_v39 = vpop.f32.mrb[2].mxu0  ;;  %v436_v40 = vpop.f32.mrb[2].mxu1 }
 0x125   : > { %v419_v41 = vadd.f32 %v418_v39, %v313_v26  ;;  %v437_v42 = vadd.f32 %v436_v40, %v328_v36  ;;  %v420_v43 = vpop.f32.mrb[3].mxu0  ;;  %v438_v44 = vpop.f32.mrb[3].mxu1 }
 0x126   : > { %v421_v45 = vadd.f32 %v420_v43, %v313_v26  ;;  %v439_v46 = vadd.f32 %v438_v44, %v328_v36  ;;  %448 = vst [vmem:[%s275_s14] sm:$0xff] %v446_v38  ;;  %445 = vst [vmem:[%s268_s17] sm:$0xff] %v443_v37 }
 0x127   : > { %449 = vst [vmem:[%s1177_s10] sm:$0xff] %v419_v41  ;;  %455 = vst [vmem:[%s1177_s10 + $0x30] sm:$0xff] %v437_v42 }
 0x128   : > { %836 = shalt.err (!%p833_p5)
}
 0x129   : > { %s837_s24 = scalar_lea.hbm %s1183_s28, 128  ;;  %s841_s17 = scalar_lea.hbm %s1315_s4, 256 }
 0x12a   : > { %p838_p4 = scmp.ne.s32.totalorder %s1183_s28, %s837_s24  ;;  %p842_p12 = scmp.lt.u32.totalorder %s1183_s28, %s1315_s4 }
 0x12b   : > { %p843_p1 = scmp.lt.u32.totalorder %s841_s17, %s837_s24  ;;  %p845_p8 = scmp.lt.u32.totalorder %s837_s24, %s1183_s28 }
 0x12c   : > { %p839_p7 = pnand %p838_p4, %p1329_p9 }
 0x12d   : > { %p844_p3 = por %p843_p1, %p842_p12 }
 0x12e   : > { %p840_p10 = pneg %p839_p7 }
 0x12f   : > { %p846_p11 = por %p845_p8, %p844_p3 }
 0x131   : > { %p847_p0 = pnand %p846_p11, %p840_p10 }
 0x133   : > { %850 = shalt.err (!%p847_p0)
}
 0x134   : > { %716 = dma.vmem_to_hbm [thread:$0]  (%p1329_p9), %s1186_s16, 128, %s1183_s28, %s1201_s0   ;;  %450 = vst [vmem:[%s1177_s10 + $0x8] sm:$0xff] %v421_v45  ;;  %456 = vst [vmem:[%s1177_s10 + $0x38] sm:$0xff] %v439_v46  ;;  %v424_v47 = vpop.f32.mrb[4].mxu0 }
 0x135   : > { %s458_s1 = scalar_lea.sflag [#allocation4], %s1125_s12  ;;  %s851_s9 = scalar_lea.vmem %s1193_s27, 128 }
 0x136   : > { %p852_p6 = scmp.ne.s32.totalorder %s1193_s27, %s851_s9  ;;  %s973_s24 = smov [#allocation5]  }
 0x137   : > { %s855_s15 = sshll.u32 %s973_s24, 4  ;;  %s856_s15 = int_to_ptr.vmem [resolvable:$false] %s855_s15 }
 0x138   : > { %p853_p13 = pnand %p852_p6, %p1329_p9  ;;  %s857_s14 = scalar_lea.vmem %s856_s15, 256 }
 0x139   : > { %p858_p5 = scmp.lt.s32.totalorder %s1193_s27, %s856_s15  ;;  %p859_p4 = scmp.lt.s32.totalorder %s857_s14, %s851_s9 }
 0x13a   : > { %p854_p2 = pneg %p853_p13 }
 0x13b   : > { %p860_p7 = por %p859_p4, %p858_p5 }
 0x13d   : > { %p861_p10 = pnand %p860_p7, %p854_p2 }
 0x13f   : > { %864 = shalt.err (!%p861_p10)
}
 0x140   : > { %s865_s12 = scalar_lea.hbm %s1191_s11, 128  ;;  %s869_s17 = scalar_lea.hbm %s1314_s3, 256 }
 0x141   : > { %p866_p12 = scmp.ne.s32.totalorder %s1191_s11, %s865_s12  ;;  %p870_p8 = scmp.lt.u32.totalorder %s1191_s11, %s1314_s3 }
 0x142   : > { %p871_p11 = scmp.lt.u32.totalorder %s869_s17, %s865_s12  ;;  %p873_p6 = scmp.lt.u32.totalorder %s865_s12, %s1191_s11 }
 0x143   : > { %p867_p1 = pnand %p866_p12, %p1329_p9 }
 0x144   : > { %p872_p0 = por %p871_p11, %p870_p8 }
 0x145   : > { %p868_p3 = pneg %p867_p1 }
 0x146   : > { %p874_p13 = por %p873_p6, %p872_p0 }
 0x148   : > { %p875_p2 = pnand %p874_p13, %p868_p3 }
 0x14a   : > { %878 = shalt.err (!%p875_p2)
}
 0x14b   : > { %715 = dma.vmem_to_hbm [thread:$0]  (%p1329_p9), %s1193_s27, 128, %s1191_s11, %s458_s1   ;;  %v425_v48 = vadd.f32 %v424_v47, %v1170_v25  ;;  %v426_v49 = vpop.f32.mrb[5].mxu0 }
 0x14c   : > { %s1259_s15 = scalar_lea.hbm %s1316_s5, %s700_s25  ;;  %v427_v50 = vadd.f32 %v426_v49, %v1170_v25  ;;  %s879_s27 = scalar_lea.vmem %s1251_s29, 1024 }
 0x14d   : > { %451 = vst [vmem:[%s1177_s10 + $0x10] sm:$0xff] %v425_v48  ;;  %p880_p5 = scmp.ne.s32.totalorder %s1251_s29, %s879_s27  ;;  %s974_s11 = smov [#allocation8]  }
 0x14e   : > { %452 = vst [vmem:[%s1177_s10 + $0x18] sm:$0xff] %v427_v50  ;;  %s883_s1 = sshll.u32 %s974_s11, 4  ;;  %s884_s1 = int_to_ptr.vmem [resolvable:$false] %s883_s1 }
 0x14f   : > { %p881_p4 = pnand %p880_p5, %p1329_p9  ;;  %s885_s14 = scalar_lea.vmem %s884_s1, 2048 }
 0x150   : > { %p886_p10 = scmp.lt.s32.totalorder %s1251_s29, %s884_s1  ;;  %p887_p12 = scmp.lt.s32.totalorder %s885_s14, %s879_s27 }
 0x151   : > { %p882_p7 = pneg %p881_p4 }
 0x152   : > { %p888_p1 = por %p887_p12, %p886_p10 }
 0x154   : > { %p889_p3 = pnand %p888_p1, %p882_p7 }
 0x156   : > { %892 = shalt.err (!%p889_p3)
}
 0x157   : > { %s893_s21 = scalar_lea.hbm %s1259_s15, 1024  ;;  %s897_s12 = scalar_lea.hbm %s1316_s5, 2048 }
 0x158   : > { %p894_p8 = scmp.ne.s32.totalorder %s1259_s15, %s893_s21  ;;  %p898_p6 = scmp.lt.u32.totalorder %s1259_s15, %s1316_s5 }
 0x159   : > { %p899_p13 = scmp.lt.u32.totalorder %s897_s12, %s893_s21  ;;  %p901_p5 = scmp.lt.u32.totalorder %s893_s21, %s1259_s15 }
 0x15a   : > { %p895_p11 = pnand %p894_p8, %p1329_p9 }
 0x15b   : > { %p900_p2 = por %p899_p13, %p898_p6 }
 0x15c   : > { %p896_p0 = pneg %p895_p11 }
 0x15d   : > { %p902_p4 = por %p901_p5, %p900_p2 }
 0x15f   : > { %p903_p7 = pnand %p902_p4, %p896_p0 }
 0x161   : > { %906 = shalt.err (!%p903_p7)
}
 0x162   : > { %s975_s17 = smov 256   ;;  %s976_s30 = smov 16  }
 0x163   : > { %717 = dma.vmem_to_hbm [thread:$0]  (%p1329_p9), %s1251_s29, 1024, %s1259_s15, %s1201_s0, %s975_s17, %s975_s17, %s976_s30  }
 0x164 PF: > { %s530_s13 = sand.u32 1, %s945_s18   ;;  %p1330_p10 = scmp.ne.s32.totalorder %s1324_s8, 0 }
 0x165   : > { %p1331_p12 = scmp.ge.s32.totalorder %s965_s23, 2  ;;  %s531_s9 = scalar_lea.sflag [#allocation4], %s530_s13 }
 0x167   : > { %p726_p1 = pnand %p1331_p12, %p1330_p10 }
 0x169   : > { %936 = dma.done.wait (!%p726_p1), %s531_s9, 128  }
 0x16a   : > { %938 = vsyncadd (!%p726_p1), %s531_s9, 4294967168  ;;  %s1332_s24 = sadd.s32 4294967294, %s965_s23  }
 0x16b   : > { %s539_s27 = sand.u32 1, %s1332_s24  }
 0x16c   : > { %s540_s11 = scalar_lea.sflag [#allocation7], %s539_s27 }
 0x16d   : > { %940 = dma.done.wait (!%p726_p1), %s540_s11, 1152  }
 0x16e   : > { %942 = vsyncadd (!%p726_p1), %s540_s11, 4294966144  ;;  %s25_s23 = sadd.s32 1, %s965_s23   ;;  %s1333_s18 = smov %s949_s19 }
 0x16f   : > { %p22_p9 = scmp.ge.s32.totalorder %s25_s23, 4   ;;  %s1334_s19 = smov %s953_s20 }
 0x170   : > { %s1335_s20 = smov %s1069_s7  ;;  %s1336_s21 = smov %s961_s22 }
 0x171   : > { %s1337_s22 = smov %s1339_s26  ;;  %24 = sbr.rel (!%p22_p9) target bundleno = 11 (0xb), region = 109 }
 0x178   :  { %554 = vsyncpa [#allocation3], 1 }
 0x179   :  { %556 = vsyncpa [#allocation3 + $0x1], 1 }
 0x17a   :  { %557 = vsyncpa [#allocation4], 1 }
 0x17b   :  { %559 = vsyncpa [#allocation4 + $0x1], 1 }
 0x17c   :  { %560 = vsyncpa [#allocation7], 1 }
 0x17d   :  { %562 = vsyncpa [#allocation7 + $0x1], 1 }

</bundles_post_ra>
